<compile_context>
chip_gen: v7x
topology: tpu7x:2x2x1
jax: 0.10.0
libtpu: 0.0.40
codegen_flags: <defaults>
</compile_context>

<pallas_src>
import math

import jax
import jax.numpy as jnp
from jax.experimental import pallas as pl
from jax.experimental.pallas import tpu as pltpu

H1, H2 = 400, 300           # logical hidden widths (match the PyTorch module)
H1_PAD, H2_PAD = 512, 384   # 128-multiple padded widths for clean vreg/MXU tiling
MAX_TB = 2048               # max batch tile


def _round_up(x, m):
    return (x + m - 1) // m * m


def _cdiv(a, b):
    return -(-a // b)


# ----------------------------------------------------------------------------
# Kernel: one batch tile of the full 3-layer MLP. Weights are VMEM-resident
# (constant index_map), inputs/outputs tiled over the batch.
# ----------------------------------------------------------------------------
def _critic_kernel(x_ref, w1_ref, b1_ref, w2_ref, b2_ref, w3_ref, b3_ref, q_ref):
    # fc1: bf16 x @ bf16 w1 on the MXU, f32 accumulate; bias/ReLU in f32.
    h1 = jnp.dot(x_ref[...], w1_ref[...], preferred_element_type=jnp.float32)
    h1 = jnp.maximum(h1 + b1_ref[...], 0.0)                                  # [TB, 512] f32

    # fc2: cast activations to bf16 for the MXU, accumulate f32.
    h2 = jnp.dot(h1.astype(jnp.bfloat16), w2_ref[...],
                 preferred_element_type=jnp.float32)
    h2 = jnp.maximum(h2 + b2_ref[...], 0.0)                                  # [TB, 384] f32

    # fc3 (out_features = 1): VPU multiply by the f32 weight row + lane reduction.
    # Avoids an MXU matmul that would be 99% padding and a 128-wide output slab.
    q = jnp.sum(h2 * w3_ref[...], axis=-1, keepdims=True)                    # [TB, 1] f32
    q_ref[...] = q + b3_ref[...]


# ----------------------------------------------------------------------------
# Wrapper
# ----------------------------------------------------------------------------
def critic_forward(obs, act, prep):
    """obs: [B, obs_dim] f32, act: [B, act_dim] f32, prep: prepare_params(...) output.
    Returns Q: [B, 1] f32."""
    obs = obs.astype(jnp.float32)
    act = act.astype(jnp.float32)
    B = obs.shape[0]

    # Single fused input stream (tiny concat copy, one DMA stream into fc1).
    x = jnp.concatenate([obs, act], axis=1).astype(jnp.bfloat16)
    K = x.shape[1]

    # Tile selection: as few / as large tiles as possible (weights are grid-invariant),
    # minimal batch padding, and >= 2 grid steps for B > 256 so both v7x TCs get work.
    n_tiles = max(1, _cdiv(B, MAX_TB))
    if B > 256:
        n_tiles = max(n_tiles, 2)
    TB = _round_up(_cdiv(B, n_tiles), 8)
    B_pad = n_tiles * TB
    if B_pad != B:
        x = jnp.pad(x, ((0, B_pad - B), (0, 0)))

    w1, b1 = prep["w1"], prep["b1"]
    w2, b2 = prep["w2"], prep["b2"]
    w3, b3 = prep["w3"], prep["b3"]

    const = lambda i: (0, 0)

    # VMEM estimate: resident weights (conservatively x2 for pipelining buffers),
    # double-buffered x/q tiles, f32 h1/h2 intermediates + bf16 casts; x2 headroom,
    # clamped to [32 MiB, 64 MiB] (safe on v5e/v6e's 128 MiB and v7x's 64 MiB).
    bf16_b, f32_b = 2, 4
    weight_bytes = (K * H1_PAD + H1_PAD * H2_PAD) * bf16_b \
        + (H1_PAD + H2_PAD + H2_PAD + 1) * f32_b
    io_bytes = 2 * TB * (K * bf16_b + 1 * f32_b)
    act_bytes = TB * (H1_PAD * (f32_b + bf16_b) + H2_PAD * (f32_b + f32_b))
    est_bytes = 2 * weight_bytes + io_bytes + act_bytes
    vmem_limit = int(min(64 * 1024 * 1024, max(32 * 1024 * 1024, 2 * est_bytes)))

    out = pl.pallas_call(
        _critic_kernel,
        out_shape=jax.ShapeDtypeStruct((B_pad, 1), jnp.float32),
        grid=(n_tiles,),
        in_specs=[
            pl.BlockSpec((TB, K), lambda i: (i, 0)),      # x tile (bf16)
            pl.BlockSpec((K, H1_PAD), const),             # w1 (bf16, resident)
            pl.BlockSpec((1, H1_PAD), const),             # b1 (f32)
            pl.BlockSpec((H1_PAD, H2_PAD), const),        # w2 (bf16, resident)
            pl.BlockSpec((1, H2_PAD), const),             # b2 (f32)
            pl.BlockSpec((1, H2_PAD), const),             # w3 row (f32)
            pl.BlockSpec((1, 1), const),                  # b3 (f32)
        ],
        out_specs=pl.BlockSpec((TB, 1), lambda i: (i, 0)),
        compiler_params=pltpu.CompilerParams(
            dimension_semantics=("parallel",),
            vmem_limit_bytes=vmem_limit,
        ),
    )(x, w1, b1, w2, b2, w3, b3)

    return out[:B]


# ----------------------------------------------------------------------------
# Parameters
# ----------------------------------------------------------------------------
def init_params(key, obs_dim, act_dim):
    """torch.nn.Linear-style init: U(-1/sqrt(fan_in), 1/sqrt(fan_in)).
    Weights stored as [in_features, out_features] (transposed vs. torch)."""
    dims = [(obs_dim + act_dim, H1), (H1, H2), (H2, 1)]
    params = {}
    for i, (fan_in, fan_out) in enumerate(dims, start=1):
        key, kw, kb = jax.random.split(key, 3)
        bound = 1.0 / math.sqrt(fan_in)
        params[f"w{i}"] = jax.random.uniform(
            kw, (fan_in, fan_out), jnp.float32, minval=-bound, maxval=bound)
        params[f"b{i}"] = jax.random.uniform(
            kb, (1, fan_out), jnp.float32, minval=-bound, maxval=bound)
    return params


def prepare_params(params, obs_dim, act_dim):
    """Zero-pad to kernel shapes; matmul weights in bf16, biases + fc3 row in f32.
    Zero padding keeps the extra hidden columns numerically inert (ReLU(0)=0)."""
    K = obs_dim + act_dim

    def pad2(a, rows, cols, dtype):
        out = jnp.zeros((rows, cols), jnp.float32)
        out = out.at[: a.shape[0], : a.shape[1]].set(a.astype(jnp.float32))
        return out.astype(dtype)

    return {
        "w1": pad2(params["w1"], K, H1_PAD, jnp.bfloat16),
        "b1": pad2(params["b1"], 1, H1_PAD, jnp.float32),
        "w2": pad2(params["w2"], H1_PAD, H2_PAD, jnp.bfloat16),
        "b2": pad2(params["b2"], 1, H2_PAD, jnp.float32),
        "w3": pad2(params["w3"].T, 1, H2_PAD, jnp.float32),   # fc3 weight as a row
        "b3": params["b3"].reshape(1, 1).astype(jnp.float32),
    }


# ----------------------------------------------------------------------------
# References
# ----------------------------------------------------------------------------
def _reference_forward_f32(obs, act, params):
    """Pure-f32 reference (matches the PyTorch module exactly)."""
    x = jnp.concatenate([obs, act], axis=1)
    h1 = jnp.maximum(x @ params["w1"] + params["b1"], 0.0)
    h2 = jnp.maximum(h1 @ params["w2"] + params["b2"], 0.0)
    return h2 @ params["w3"] + params["b3"]


def _reference_forward_bf16(obs, act, params):
    """Plain-JAX reference with the same bf16-operand / f32-accumulate recipe as the kernel."""
    x = jnp.concatenate([obs, act], axis=1).astype(jnp.bfloat16)
    h1 = jnp.dot(x, params["w1"].astype(jnp.bfloat16),
                 preferred_element_type=jnp.float32) + params["b1"]
    h1 = jnp.maximum(h1, 0.0)
    h2 = jnp.dot(h1.astype(jnp.bfloat16), params["w2"].astype(jnp.bfloat16),
                 preferred_element_type=jnp.float32) + params["b2"]
    h2 = jnp.maximum(h2, 0.0)
    return h2 @ params["w3"] + params["b3"]          # fc3 stays f32, like the kernel


if __name__ == "__main__":
    obs_dim, act_dim, batch = 16, 4, 8

    key = jax.random.PRNGKey(0)
    key, k_obs, k_act = jax.random.split(key, 3)
    obs = jax.random.normal(k_obs, (batch, obs_dim), jnp.float32)
    act = jax.random.normal(k_act, (batch, act_dim), jnp.float32)

    params = init_params(key, obs_dim, act_dim)
    prep = prepare_params(params, obs_dim, act_dim)

    q = critic_forward(obs, act, prep)
    q = jax.block_until_ready(q)
    assert q.shape == (batch, 1)

    # Tight check vs. a reference using the same bf16-matmul / f32-accumulate recipe.
    q_bf16_ref = _reference_forward_bf16(obs, act, params)
    assert jnp.allclose(q, q_bf16_ref, atol=1e-3, rtol=1e-3), "mismatch vs bf16 reference"

    # Loosened check vs. the exact f32 module (bf16 matmul operands round the inputs).
    q_f32_ref = _reference_forward_f32(obs, act, params)
    assert jnp.allclose(q, q_f32_ref, atol=2e-2, rtol=2e-2), "mismatch vs f32 reference"

    print("KERNEL_OK")
</pallas_src>

<mosaic_0001>
module attributes {stable_mosaic.version = 11 : i64} {
  func.func @_critic_kernel(%arg0: i32, %arg1: memref<8x20xbf16, #tpu.memory_space<vmem>>, %arg2: memref<20x512xbf16, #tpu.memory_space<vmem>>, %arg3: memref<1x512xf32, #tpu.memory_space<vmem>>, %arg4: memref<512x384xbf16, #tpu.memory_space<vmem>>, %arg5: memref<1x384xf32, #tpu.memory_space<vmem>>, %arg6: memref<1x384xf32, #tpu.memory_space<vmem>>, %arg7: memref<1x1xf32, #tpu.memory_space<vmem>>, %arg8: memref<8x1xf32, #tpu.memory_space<vmem>>) attributes {dimension_semantics = [#tpu.dimension_semantics<parallel>], iteration_bounds = array<i64: 1>, scalar_prefetch = 0 : i64, scratch_operands = 0 : i64, tpu.core_type = #tpu.core_type<tc>, window_params = [{transform_indices = @transform_0, window_bounds = array<i64: 8, 20>}, {pipeline_mode = #tpu.pipeline_mode<synchronous>, transform_indices = @transform_1, window_bounds = array<i64: 20, 512>}, {pipeline_mode = #tpu.pipeline_mode<synchronous>, transform_indices = @transform_2, window_bounds = array<i64: 1, 512>}, {pipeline_mode = #tpu.pipeline_mode<synchronous>, transform_indices = @transform_3, window_bounds = array<i64: 512, 384>}, {pipeline_mode = #tpu.pipeline_mode<synchronous>, transform_indices = @transform_4, window_bounds = array<i64: 1, 384>}, {pipeline_mode = #tpu.pipeline_mode<synchronous>, transform_indices = @transform_5, window_bounds = array<i64: 1, 384>}, {pipeline_mode = #tpu.pipeline_mode<synchronous>, transform_indices = @transform_6, window_bounds = array<i64: 1, 1>}, {transform_indices = @transform_7, window_bounds = array<i64: 8, 1>}]} {
    %c0 = arith.constant 0 : index
    %c0_0 = arith.constant 0 : index
    %0 = vector.load %arg1[%c0, %c0_0] : memref<8x20xbf16, #tpu.memory_space<vmem>>, vector<8x20xbf16>
    %c0_1 = arith.constant 0 : index
    %c0_2 = arith.constant 0 : index
    %1 = vector.load %arg2[%c0_1, %c0_2] : memref<20x512xbf16, #tpu.memory_space<vmem>>, vector<20x512xbf16>
    %cst = arith.constant dense<0.000000e+00> : vector<8x512xf32>
    %2 = tpu.matmul %0, %1, %cst {dimension_numbers = #tpu.dot_dimension_numbers<[1], [0], [0], [1], [0, 0, 1, 1], [], []>} : vector<8x20xbf16>, vector<20x512xbf16>, vector<8x512xf32> -> vector<8x512xf32>
    %c0_3 = arith.constant 0 : index
    %c0_4 = arith.constant 0 : index
    %3 = vector.load %arg3[%c0_3, %c0_4] : memref<1x512xf32, #tpu.memory_space<vmem>>, vector<1x512xf32>
    %4 = vector.broadcast %3 : vector<1x512xf32> to vector<8x512xf32>
    %5 = arith.addf %2, %4 : vector<8x512xf32>
    %cst_5 = arith.constant 0.000000e+00 : f32
    %6 = vector.broadcast %cst_5 : f32 to vector<8x512xf32>
    %7 = arith.maximumf %5, %6 : vector<8x512xf32>
    %8 = arith.truncf %7 : vector<8x512xf32> to vector<8x512xbf16>
    %c0_6 = arith.constant 0 : index
    %c0_7 = arith.constant 0 : index
    %9 = vector.load %arg4[%c0_6, %c0_7] : memref<512x384xbf16, #tpu.memory_space<vmem>>, vector<512x384xbf16>
    %cst_8 = arith.constant dense<0.000000e+00> : vector<8x384xf32>
    %10 = tpu.matmul %8, %9, %cst_8 {dimension_numbers = #tpu.dot_dimension_numbers<[1], [0], [0], [1], [0, 0, 1, 1], [], []>} : vector<8x512xbf16>, vector<512x384xbf16>, vector<8x384xf32> -> vector<8x384xf32>
    %c0_9 = arith.constant 0 : index
    %c0_10 = arith.constant 0 : index
    %11 = vector.load %arg5[%c0_9, %c0_10] : memref<1x384xf32, #tpu.memory_space<vmem>>, vector<1x384xf32>
    %12 = vector.broadcast %11 : vector<1x384xf32> to vector<8x384xf32>
    %13 = arith.addf %10, %12 : vector<8x384xf32>
    %cst_11 = arith.constant 0.000000e+00 : f32
    %14 = vector.broadcast %cst_11 : f32 to vector<8x384xf32>
    %15 = arith.maximumf %13, %14 : vector<8x384xf32>
    %c0_12 = arith.constant 0 : index
    %c0_13 = arith.constant 0 : index
    %16 = vector.load %arg6[%c0_12, %c0_13] : memref<1x384xf32, #tpu.memory_space<vmem>>, vector<1x384xf32>
    %17 = vector.broadcast %16 : vector<1x384xf32> to vector<8x384xf32>
    %18 = arith.mulf %15, %17 : vector<8x384xf32>
    %cst_14 = arith.constant dense<0.000000e+00> : vector<8xf32>
    %19 = vector.multi_reduction <add>, %18, %cst_14 [1] : vector<8x384xf32> to vector<8xf32>
    %20 = vector.shape_cast %19 : vector<8xf32> to vector<8x1xf32>
    %c0_15 = arith.constant 0 : index
    %c0_16 = arith.constant 0 : index
    %21 = vector.load %arg7[%c0_15, %c0_16] : memref<1x1xf32, #tpu.memory_space<vmem>>, vector<1x1xf32>
    %22 = vector.broadcast %21 : vector<1x1xf32> to vector<8x1xf32>
    %23 = arith.addf %20, %22 : vector<8x1xf32>
    %c0_17 = arith.constant 0 : index
    %c0_18 = arith.constant 0 : index
    %24 = vector.load %arg8[%c0_17, %c0_18] : memref<8x1xf32, #tpu.memory_space<vmem>>, vector<8x1xf32>
    tpu.vector_store %arg8[%c0_17, %c0_18], %23 {strides = array<i32>} : memref<8x1xf32, #tpu.memory_space<vmem>>, vector<8x1xf32>,
    return
  }
  func.func @transform_0(%arg0: i32) -> (i32, i32) {
    %c0_i32 = arith.constant 0 : i32
    %c0_i32_0 = arith.constant 0 : i32
    return %arg0, %c0_i32 : i32, i32
  }
  func.func @transform_1(%arg0: i32) -> (i32, i32) {
    %c0_i32 = arith.constant 0 : i32
    %c0_i32_0 = arith.constant 0 : i32
    %c0_i32_1 = arith.constant 0 : i32
    return %c0_i32, %c0_i32_0 : i32, i32
  }
  func.func @transform_2(%arg0: i32) -> (i32, i32) {
    %c0_i32 = arith.constant 0 : i32
    %c0_i32_0 = arith.constant 0 : i32
    %c0_i32_1 = arith.constant 0 : i32
    return %c0_i32, %c0_i32_0 : i32, i32
  }
  func.func @transform_3(%arg0: i32) -> (i32, i32) {
    %c0_i32 = arith.constant 0 : i32
    %c0_i32_0 = arith.constant 0 : i32
    %c0_i32_1 = arith.constant 0 : i32
    return %c0_i32, %c0_i32_0 : i32, i32
  }
  func.func @transform_4(%arg0: i32) -> (i32, i32) {
    %c0_i32 = arith.constant 0 : i32
    %c0_i32_0 = arith.constant 0 : i32
    %c0_i32_1 = arith.constant 0 : i32
    return %c0_i32, %c0_i32_0 : i32, i32
  }
  func.func @transform_5(%arg0: i32) -> (i32, i32) {
    %c0_i32 = arith.constant 0 : i32
    %c0_i32_0 = arith.constant 0 : i32
    %c0_i32_1 = arith.constant 0 : i32
    return %c0_i32, %c0_i32_0 : i32, i32
  }
  func.func @transform_6(%arg0: i32) -> (i32, i32) {
    %c0_i32 = arith.constant 0 : i32
    %c0_i32_0 = arith.constant 0 : i32
    %c0_i32_1 = arith.constant 0 : i32
    return %c0_i32, %c0_i32_0 : i32, i32
  }
  func.func @transform_7(%arg0: i32) -> (i32, i32) {
    %c0_i32 = arith.constant 0 : i32
    %c0_i32_0 = arith.constant 0 : i32
    return %arg0, %c0_i32 : i32, i32
  }
}

</mosaic_0001>

<bundles_post_ra>
// kernel: tpu_custom_call.1
= control target key start
LH: loop header
LB: loop body
LE: loop exit
PB: predicated region body
PF: predicated region fallthrough
CT: control target
= control target key end

     0   :  { %s1597_s0 = inlined_call_operand.hbm [shape: bf16[8,20], index: 0, kind: input, shape index: {}]   ;;  %s1598_s1 = inlined_call_operand.hbm [shape: bf16[20,512], index: 1, kind: input, shape index: {}]   ;;  %s1599_s2 = inlined_call_operand.vmem [shape: f32[1,512], index: 2, kind: input, shape index: {}]   ;;  %s1600_s3 = inlined_call_operand.hbm [shape: bf16[512,384], index: 3, kind: input, shape index: {}]   ;;  %s1601_s4 = inlined_call_operand.vmem [shape: f32[1,384], index: 4, kind: input, shape index: {}]   ;;  %s1602_s5 = inlined_call_operand.vmem [shape: f32[1,384], index: 5, kind: input, shape index: {}]   ;;  %s1603_s6 = inlined_call_operand.<no memory space> [shape: f32[1,1], index: 6, kind: input, shape index: {}]   ;;  %s1604_s7 = inlined_call_operand.vmem [shape: f32[8,1], index: 7, kind: output, shape index: {}]  }
   0x1   :  { %v12_v0 = vstv %s1603_s6 }
   0x2   :  { %13 = vst [vmem:[#allocation2] sm:$0x1] %v12_v0 }
   0x3   :  { %14 = vsyncpa [#allocation4], 0 }
   0x4   :  { %15 = vsyncpa [#allocation6], 0  ;;  %s1471_s26 = smov [#allocation5]   ;;  %s1401_s30 = scalar_lea.hbm %s1598_s1, 768 }
   0x5   :  { %s31_s27 = sshll.u32 %s1471_s26, 4  ;;  %p1402_p0 = scmp.ne.s32.totalorder %s1598_s1, %s1401_s30  ;;  %s32_s27 = int_to_ptr.vmem [resolvable:$true] %s31_s27 }
   0x6   :  { %p1405_p1 = scmp.lt.u32.totalorder %s1401_s30, %s1598_s1 }
   0x8   :  { %p1407_p2 = pnand %p1405_p1, %p1402_p0 }
   0xa   :  { %1410 = shalt.err (!%p1407_p2)
}
   0xb   :  { %s1411_s6 = scalar_lea.vmem %s32_s27, 768  ;;  %p1416_p4 = scmp.lt.s32.totalorder %s32_s27, %s32_s27 }
   0xc   :  { %p1412_p3 = scmp.ne.s32.totalorder %s32_s27, %s1411_s6  ;;  %p1417_p5 = scmp.lt.s32.totalorder %s1411_s6, %s1411_s6 }
   0xe   :  { %p1418_p6 = por %p1417_p5, %p1416_p4 }
  0x10   :  { %p1419_p7 = pnand %p1418_p6, %p1412_p3 }
  0x12   :  { %1422 = shalt.err (!%p1419_p7)
}
  0x13   :  { %s1472_s12 = smov 256   ;;  %s1473_s13 = smov 16  }
  0x14   :  { %37 = dma.hbm_to_vmem [thread:$0]  %s1598_s1, 768, %s32_s27, [#allocation6], %s1472_s12, %s1472_s12, %s1473_s13  }
  0x15   :  { %s1474_s16 = smov [#allocation3]   ;;  %s1475_s18 = smov [#allocation7]  }
  0x16   :  { %s22_s17 = sshll.u32 %s1474_s16, 4  ;;  %s45_s19 = sshll.u32 %s1475_s18, 4  ;;  %s23_s17 = int_to_ptr.vmem [resolvable:$true] %s22_s17  ;;  %s46_s19 = int_to_ptr.vmem [resolvable:$true] %s45_s19 }
  0x17   :  { %s1423_s22 = scalar_lea.hbm %s1597_s0, 64 }
  0x18   :  { %p1424_p8 = scmp.ne.s32.totalorder %s1597_s0, %s1423_s22  ;;  %p1427_p9 = scmp.lt.u32.totalorder %s1423_s22, %s1597_s0 }
  0x1a   :  { %p1429_p10 = pnand %p1427_p9, %p1424_p8 }
  0x1c   :  { %1432 = shalt.err (!%p1429_p10)
}
  0x1d   :  { %s1433_s1 = scalar_lea.vmem %s23_s17, 64  ;;  %p1438_p12 = scmp.lt.s32.totalorder %s23_s17, %s23_s17 }
  0x1e   :  { %p1434_p11 = scmp.ne.s32.totalorder %s23_s17, %s1433_s1  ;;  %p1439_p13 = scmp.lt.s32.totalorder %s1433_s1, %s1433_s1 }
  0x20   :  { %p1440_p0 = por %p1439_p13, %p1438_p12 }
  0x22   :  { %p1441_p1 = pnand %p1440_p0, %p1434_p11 }
  0x24   :  { %1444 = shalt.err (!%p1441_p1)
}
  0x25   :  { %25 = dma.hbm_to_vmem [thread:$0]  %s1597_s0, 64, %s23_s17, [#allocation4]  }
  0x26   :  { %s1445_s8 = scalar_lea.hbm %s1600_s3, 12288 }
  0x27   :  { %p1446_p2 = scmp.ne.s32.totalorder %s1600_s3, %s1445_s8  ;;  %p1449_p3 = scmp.lt.u32.totalorder %s1445_s8, %s1600_s3 }
  0x29   :  { %p1451_p4 = pnand %p1449_p3, %p1446_p2 }
  0x2b   :  { %1454 = shalt.err (!%p1451_p4)
}
  0x2c   :  { %s1455_s12 = scalar_lea.vmem %s46_s19, 12288  ;;  %p1460_p6 = scmp.lt.s32.totalorder %s46_s19, %s46_s19 }
  0x2d   :  { %p1456_p5 = scmp.ne.s32.totalorder %s46_s19, %s1455_s12  ;;  %p1461_p7 = scmp.lt.s32.totalorder %s1455_s12, %s1455_s12 }
  0x2f   :  { %p1462_p8 = por %p1461_p7, %p1460_p6 }
  0x31   :  { %p1463_p9 = pnand %p1462_p8, %p1456_p5 }
  0x33   :  { %1466 = shalt.err (!%p1463_p9)
}
  0x34   :  { %s1476_s0 = smov 192   ;;  %s1477_s13 = smov 12  }
  0x35   :  { %51 = dma.hbm_to_vmem [thread:$0]  %s1600_s3, 12288, %s46_s19, [#allocation6], %s1476_s0, %s1476_s0, %s1477_s13  }
  0x36   :  { %1467 = dma.done.wait [#allocation4], 64  }
  0x37   :  { %1468 = vsyncadd [#allocation4], 4294967232 }
  0x38   :  { %1469 = dma.done.wait [#allocation6], 13056  }
  0x39   :  { %1470 = vsyncadd [#allocation6], 4294954240  ;;  %v1478_v1 = vmov 0   ;;  %v1263_v2 = vld [vmem:[#allocation5 + $0x4] ss:$16 sps:$4 sm:$0xff]   ;;  %vm131_vm0 = vcmask 1041408  }
  0x3a   :  { %176 = vmatprep.mubr.bf16.mxu1 %v1478_v1  ;;  %v1265_v3 = vld [vmem:[#allocation5] ss:$16 sps:$4 sm:$0xff]   ;;  %144 = vmatprep.subr.bf16.mxu1 %v1263_v2  ;;  %v1270_v7 = vld [vmem:[#allocation5 + $0xc] ss:$16 sps:$4 sm:$0xff]   ;;  %vm127_vm1 = vcmask 162816   ;;  %vm1088_vm2 = vcmask 7168  }
  0x3b   :  { %v73_v4 = vld [vmem:[#allocation5 + $0x20] sm:$0x33]  ;;  %145 = vmatpush1.bf16.msra.mxu1 %v1265_v3  ;;  %v74_v8 = vld [vmem:[#allocation5 + $0x28] sm:$0x33]  ;;  %v1275_v11 = vld [vmem:[#allocation7] ss:$12 sps:$4 sm:$0xff]  }
  0x3c   :  { %v1101_v5 = vcombine.high %v73_v4, %v73_v4  ;;  %v1100_v6 = vcombine.low %v73_v4, %v73_v4  ;;  %v1273_v10 = vld [vmem:[#allocation7 + $0x4] ss:$12 sps:$4 sm:$0xff]   ;;  %v1276_v12 = vld [vmem:[#allocation7 + $0x1c] ss:$12 sps:$4 sm:$0xff]   ;;  %v68_v13 = vld [vmem:[#allocation3] sm:$0xf]  ;;  %v1103_v15 = vcombine.high %v74_v8, %v74_v8  ;;  %v1102_v16 = vcombine.low %v74_v8, %v74_v8 }
  0x3d   :  { %891 = vmatprep.subr.bf16.mxu0 %v1273_v10  ;;  %v1268_v14 = vld [vmem:[#allocation5 + $0x8] ss:$16 sps:$4 sm:$0xff]   ;;  %v1279_v18 = vld [vmem:[#allocation7 + $0x34] ss:$12 sps:$4 sm:$0xff]   ;;  %v1281_v20 = vld [vmem:[#allocation7 + $0x30] ss:$12 sps:$4 sm:$0xff]  }
  0x3e   :  { %1104 = vmatprep.subr.msk.bf16.mxu1 %vm131_vm0, %v1101_v5  ;;  %v133_v9 = vsel %vm131_vm0, %v1100_v6, 0  ;;  %892 = vmatpush1.bf16.msra.mxu0 %v1275_v11  ;;  %v1278_v17 = vld [vmem:[#allocation7 + $0x18] ss:$12 sps:$4 sm:$0xff]   ;;  %v139_v19 = vsel %vm131_vm0, %v1102_v16, 0  ;;  %v1284_v22 = vld [vmem:[#allocation7 + $0x48] ss:$12 sps:$4 sm:$0xff]  }
  0x3f   :  { %147 = vmatpush1.bf16.msra.mxu1 %v133_v9  ;;  %893 = vmatprep.subr.bf16.mxu0 %v1276_v12  ;;  %v1282_v21 = vld [vmem:[#allocation7 + $0x4c] ss:$12 sps:$4 sm:$0xff]   ;;  %v1285_v23 = vld [vmem:[#allocation7 + $0x64] ss:$12 sps:$4 sm:$0xff]   ;;  %v1299_v24 = vld [vmem:[#allocation7 + $0xc8] ss:$12 sps:$4 sm:$0xff]  }
  0x40   :  { %185 = vmatprep.subr.bf16.mxu1 %v1270_v7  ;;  %v1301_v25 = vld [vmem:[#allocation7 + $0x8] ss:$12 sps:$4 sm:$0xff]   ;;  %v1287_v26 = vld [vmem:[#allocation7 + $0x60] ss:$12 sps:$4 sm:$0xff]   ;;  %v1309_v30 = vld [vmem:[#allocation7 + $0xf8] ss:$12 sps:$4 sm:$0xff]  }
  0x41   :  { %v1304_v27 = vld [vmem:[#allocation7 + $0xe0] ss:$12 sps:$4 sm:$0xff]   ;;  %v1288_v29 = vld [vmem:[#allocation7 + $0x7c] ss:$12 sps:$4 sm:$0xff]   ;;  %v1290_v31 = vld [vmem:[#allocation7 + $0x78] ss:$12 sps:$4 sm:$0xff]  }
  0x42   :  { %1105 = vmatmul.mubr.msk.bf16.vlgmr.msra.gmra.mrb[0].mxu1 %vm127_vm1, %v68_v13  ;;  %894 = vmatpush1.bf16.msra.mxu0 %v1278_v17  ;;  %v1306_v28 = vld [vmem:[#allocation7 + $0x20] ss:$12 sps:$4 sm:$0xff]   ;;  %v1311_v32 = vld [vmem:[#allocation7 + $0x38] ss:$12 sps:$4 sm:$0xff]   ;;  %v1314_v34 = vld [vmem:[#allocation7 + $0x110] ss:$12 sps:$4 sm:$0xff]  }
  0x43   :  { %186 = vmatpush1.bf16.msra.mxu1 %v1268_v14  ;;  %217 = vmatprep.mubr.bf16.mxu1 %v1478_v1  ;;  %v1291_v33 = vld [vmem:[#allocation7 + $0x94] ss:$12 sps:$4 sm:$0xff]   ;;  %v1316_v35 = vld [vmem:[#allocation7 + $0x50] ss:$12 sps:$4 sm:$0xff]   ;;  %v1294_v37 = vld [vmem:[#allocation7 + $0xac] ss:$12 sps:$4 sm:$0xff]   ;;  %v77_v1 = vlaneseq }
  0x44   :  { %1106 = vmatprep.subr.msk.bf16.mxu1 %vm131_vm0, %v1103_v15  ;;  %895 = vmatprep.subr.bf16.mxu0 %v1279_v18  ;;  %v1293_v36 = vld [vmem:[#allocation7 + $0x90] ss:$12 sps:$4 sm:$0xff]   ;;  %v1319_v38 = vld [vmem:[#allocation7 + $0x128] ss:$12 sps:$4 sm:$0xff]   ;;  %v1324_v41 = vld [vmem:[#allocation7 + $0x140] ss:$12 sps:$4 sm:$0xff]  }
  0x45   :  { %v1296_v39 = vld [vmem:[#allocation7 + $0xa8] ss:$12 sps:$4 sm:$0xff]   ;;  %v1297_v42 = vld [vmem:[#allocation7 + $0xc4] ss:$12 sps:$4 sm:$0xff]   ;;  %v1300_v43 = vld [vmem:[#allocation7 + $0xc0] ss:$12 sps:$4 sm:$0xff]  }
  0x46   :  { %896 = vmatpush1.bf16.msra.mxu0 %v1281_v20  ;;  %v1321_v40 = vld [vmem:[#allocation7 + $0x68] ss:$12 sps:$4 sm:$0xff]   ;;  %v1326_v44 = vld [vmem:[#allocation7 + $0x80] ss:$12 sps:$4 sm:$0xff]   ;;  %v1305_v46 = vld [vmem:[#allocation7 + $0xd8] ss:$12 sps:$4 sm:$0xff]  }
  0x47   :  { %188 = vmatpush1.bf16.msra.mxu1 %v139_v19  ;;  %897 = vmatprep.subr.bf16.mxu0 %v1282_v21  ;;  %v1302_v45 = vld [vmem:[#allocation7 + $0xdc] ss:$12 sps:$4 sm:$0xff]   ;;  %v1307_v47 = vld [vmem:[#allocation7 + $0xf4] ss:$12 sps:$4 sm:$0xff]   ;;  %v1312_v49 = vld [vmem:[#allocation7 + $0x10c] ss:$12 sps:$4 sm:$0xff]  }
  0x48   :  { %1205 = vmatprep.subr.bf16.mxu1 %v1299_v24  ;;  %v1310_v48 = vld [vmem:[#allocation7 + $0xf0] ss:$12 sps:$4 sm:$0xff]   ;;  %v1315_v50 = vld [vmem:[#allocation7 + $0x108] ss:$12 sps:$4 sm:$0xff]   ;;  %v1320_v52 = vld [vmem:[#allocation7 + $0x120] ss:$12 sps:$4 sm:$0xff]  }
  0x49   :  { %v1317_v51 = vld [vmem:[#allocation7 + $0x124] ss:$12 sps:$4 sm:$0xff]   ;;  %v1322_v53 = vld [vmem:[#allocation7 + $0x13c] ss:$12 sps:$4 sm:$0xff]   ;;  %v1327_v55 = vld [vmem:[#allocation7 + $0x154] ss:$12 sps:$4 sm:$0xff]  }
  0x4a   :  { %1107 = vmatmul.mubr.msk.bf16.vlgmr.msra.gmra.mrb[4].mxu1 %vm127_vm1, %v68_v13  ;;  %898 = vmatpush1.bf16.msra.mxu0 %v1284_v22  ;;  %v1325_v54 = vld [vmem:[#allocation7 + $0x138] ss:$12 sps:$4 sm:$0xff]   ;;  %v1330_v57 = vld [vmem:[#allocation7 + $0x150] ss:$12 sps:$4 sm:$0xff]   ;;  %v1335_v61 = vld [vmem:[#allocation7 + $0x168] ss:$12 sps:$4 sm:$0xff]  }
  0x4b   :  { %1206 = vmatpush3.bf16.msra.mxu1 %v1301_v25  ;;  %899 = vmatprep.subr.bf16.mxu0 %v1285_v23  ;;  %v1329_v56 = vld [vmem:[#allocation7 + $0x158] ss:$12 sps:$4 sm:$0xff]   ;;  %v1334_v60 = vld [vmem:[#allocation7 + $0x170] ss:$12 sps:$4 sm:$0xff]   ;;  %v1340_v0 = vld [vmem:[#allocation7 + $0x248] ss:$12 sps:$4 sm:$0xff]  }
  0x4c   :  { %1207 = vmatprep.subr.bf16.mxu1 %v1304_v27  ;;  %v1331_v58 = vld [vmem:[#allocation7 + $0x98] ss:$12 sps:$4 sm:$0xff]   ;;  %v1336_v62 = vld [vmem:[#allocation7 + $0xb0] ss:$12 sps:$4 sm:$0xff]   ;;  %v78_v2 = vshrl.u32 %v77_v1, 7 }
  0x4d   :  { %v1332_v59 = vld [vmem:[#allocation7 + $0x16c] ss:$12 sps:$4 sm:$0xff]   ;;  %v1339_v63 = vld [vmem:[#allocation7 + $0x184] ss:$12 sps:$4 sm:$0xff]   ;;  %v1341_v19 = vld [vmem:[#allocation7 + $0x188] ss:$12 sps:$4 sm:$0xff]  }
  0x4e   :  { %900 = vmatpush1.bf16.msra.mxu0 %v1287_v26  ;;  %v1564_v3 = vsub.s32 0, %v78_v2  ;;  %v1569_v4 = vld [vmem:[%s1599_s2] sm:$0xf]  ;;  %v1571_v5 = vsub.s32 1, %v78_v2  ;;  %v91_v13 = vsub.s32 3, %v78_v2 }
  0x4f   :  { %1208 = vmatpush3.bf16.msra.mxu1 %v1306_v28  ;;  %901 = vmatprep.subr.bf16.mxu0 %v1288_v29  ;;  %v1337_v18 = vld [vmem:[#allocation7 + $0x180] ss:$12 sps:$4 sm:$0xff]   ;;  %v1344_v22 = vld [vmem:[#allocation7 + $0x19c] ss:$12 sps:$4 sm:$0xff]   ;;  %v1342_v26 = vld [vmem:[#allocation7 + $0x198] ss:$12 sps:$4 sm:$0xff]  }
  0x50   :  { %1209 = vmatprep.subr.bf16.mxu1 %v1309_v30  ;;  %v80_v6 = vrot.slane %v1569_v4, %v1564_v3  ;;  %v84_v7 = vrot.slane %v1569_v4, %v1571_v5  ;;  %v92_v20 = vrot.slane %v1569_v4, %v91_v13  ;;  %v1345_v23 = vld [vmem:[#allocation7 + $0x260] ss:$12 sps:$4 sm:$0xff]   ;;  %v1380_v1 = vld [vmem:[#allocation7 + $0x258] ss:$12 sps:$4 sm:$0xff]   ;;  %v1395_v13 = vld [vmem:[#allocation7 + $0x2d0] ss:$12 sps:$4 sm:$0xff]  }
  0x51   :  { %v1346_v27 = vld [vmem:[#allocation7 + $0x1a0] ss:$12 sps:$4 sm:$0xff]  }
  0x52   :  { %902 = vmatpush1.bf16.msra.mxu0 %v1290_v31  ;;  %v1349_v30 = vld [vmem:[#allocation7 + $0x1b4] ss:$12 sps:$4 sm:$0xff]   ;;  %v1350_v31 = vld [vmem:[#allocation7 + $0x278] ss:$12 sps:$4 sm:$0xff]  }
  0x53   :  { %1210 = vmatpush3.bf16.msra.mxu1 %v1311_v32  ;;  %903 = vmatprep.subr.bf16.mxu0 %v1291_v33 }
  0x54   :  { %1211 = vmatprep.subr.bf16.mxu1 %v1314_v34  ;;  %v1347_v34 = vld [vmem:[#allocation7 + $0x1b0] ss:$12 sps:$4 sm:$0xff]  }
  0x56   :  { %904 = vmatpush1.bf16.msra.mxu0 %v1293_v36 }
  0x57   :  { %1212 = vmatpush3.bf16.msra.mxu1 %v1316_v35  ;;  %905 = vmatprep.subr.bf16.mxu0 %v1294_v37  ;;  %v1351_v35 = vld [vmem:[#allocation7 + $0x1b8] ss:$12 sps:$4 sm:$0xff]  }
  0x58   :  { %1213 = vmatprep.subr.bf16.mxu1 %v1319_v38  ;;  %v1354_v37 = vld [vmem:[#allocation7 + $0x1cc] ss:$12 sps:$4 sm:$0xff]   ;;  %v1355_v38 = vld [vmem:[#allocation7 + $0x290] ss:$12 sps:$4 sm:$0xff]  }
  0x5a   :  { %906 = vmatpush1.bf16.msra.mxu0 %v1296_v39  ;;  %v1352_v39 = vld [vmem:[#allocation7 + $0x1c8] ss:$12 sps:$4 sm:$0xff]  }
  0x5b   :  { %1214 = vmatpush3.bf16.msra.mxu1 %v1321_v40  ;;  %907 = vmatprep.subr.bf16.mxu0 %v1297_v42  ;;  %v1356_v40 = vld [vmem:[#allocation7 + $0x1d0] ss:$12 sps:$4 sm:$0xff]   ;;  %v1360_v42 = vld [vmem:[#allocation7 + $0x2a8] ss:$12 sps:$4 sm:$0xff]  }
  0x5c   :  { %1215 = vmatprep.subr.bf16.mxu1 %v1324_v41  ;;  %v1359_v41 = vld [vmem:[#allocation7 + $0x1e4] ss:$12 sps:$4 sm:$0xff]  }
  0x5e   :  { %908 = vmatpush1.bf16.msra.mxu0 %v1300_v43  ;;  %v1578_v43 = vsub.s32 2, %v78_v2  ;;  %v1385_v2 = vld [vmem:[#allocation7 + $0x274] ss:$12 sps:$4 sm:$0xff]  }
  0x5f   :  { %1216 = vmatpush3.bf16.msra.mxu1 %v1326_v44  ;;  %909 = vmatprep.subr.bf16.mxu0 %v1302_v45  ;;  %v1357_v44 = vld [vmem:[#allocation7 + $0x1e0] ss:$12 sps:$4 sm:$0xff]   ;;  %v1361_v45 = vld [vmem:[#allocation7 + $0x1e8] ss:$12 sps:$4 sm:$0xff]  }
  0x60   :  { %1217 = vmatprep.subr.bf16.mxu1 %v1329_v56  ;;  %v1374_v56 = vld [vmem:[#allocation7 + $0x22c] ss:$12 sps:$4 sm:$0xff]  }
  0x62   :  { %910 = vmatpush1.bf16.msra.mxu0 %v1305_v46  ;;  %v1364_v46 = vld [vmem:[#allocation7 + $0x1fc] ss:$12 sps:$4 sm:$0xff]  }
  0x63   :  { %911 = vmatprep.subr.bf16.mxu0 %v1307_v47  ;;  %1218 = vmatpush3.bf16.msra.mxu1 %v1331_v58  ;;  %v1365_v47 = vld [vmem:[#allocation7 + $0x2c0] ss:$12 sps:$4 sm:$0xff]  }
  0x64   :  { %1219 = vmatprep.subr.bf16.mxu1 %v1334_v60  ;;  %v1376_v60 = vld [vmem:[#allocation7 + $0x230] ss:$12 sps:$4 sm:$0xff]  }
  0x66   :  { %912 = vmatpush1.bf16.msra.mxu0 %v1310_v48  ;;  %v88_v48 = vrot.slane %v1569_v4, %v1578_v43  ;;  %v1383_v4 = vld [vmem:[#allocation7 + $0x270] ss:$12 sps:$4 sm:$0xff]  }
  0x67   :  { %913 = vmatprep.subr.bf16.mxu0 %v1312_v49  ;;  %1220 = vmatpush3.bf16.msra.mxu1 %v1336_v62  ;;  %v1362_v49 = vld [vmem:[#allocation7 + $0x1f8] ss:$12 sps:$4 sm:$0xff]  }
  0x68   :  { %1227 = vmatprep.subr.bf16.mxu1 %v1340_v0  ;;  %v1382_v0 = vld [vmem:[#allocation7 + $0x25c] ss:$12 sps:$4 sm:$0xff]  }
  0x6a   :  { %914 = vmatpush1.bf16.msra.mxu0 %v1315_v50  ;;  %v1366_v50 = vld [vmem:[#allocation7 + $0x200] ss:$12 sps:$4 sm:$0xff]  }
  0x6b   :  { %915 = vmatprep.subr.bf16.mxu0 %v1317_v51  ;;  %v1369_v51 = vld [vmem:[#allocation7 + $0x214] ss:$12 sps:$4 sm:$0xff]  }
  0x6e   :  { %916 = vmatpush1.bf16.msra.mxu0 %v1320_v52  ;;  %v1370_v52 = vld [vmem:[#allocation7 + $0x2d8] ss:$12 sps:$4 sm:$0xff]  }
  0x6f   :  { %917 = vmatprep.subr.bf16.mxu0 %v1322_v53 }
  0x72   :  { %918 = vmatpush1.bf16.msra.mxu0 %v1325_v54  ;;  %v1367_v54 = vld [vmem:[#allocation7 + $0x210] ss:$12 sps:$4 sm:$0xff]  }
  0x73   :  { %919 = vmatprep.subr.bf16.mxu0 %v1327_v55  ;;  %v1371_v55 = vld [vmem:[#allocation7 + $0x218] ss:$12 sps:$4 sm:$0xff]  }
  0x76   :  { %920 = vmatpush1.bf16.msra.mxu0 %v1330_v57  ;;  %v1375_v57 = vld [vmem:[#allocation7 + $0x2f0] ss:$12 sps:$4 sm:$0xff]  }
  0x77   :  { %921 = vmatprep.subr.bf16.mxu0 %v1332_v59  ;;  %v1372_v59 = vld [vmem:[#allocation7 + $0x228] ss:$12 sps:$4 sm:$0xff]  }
  0x7a   :  { %922 = vmatpush1.bf16.msra.mxu0 %v1335_v61  ;;  %v1379_v61 = vld [vmem:[#allocation7 + $0x244] ss:$12 sps:$4 sm:$0xff]  }
  0x7b   :  { %932 = vmatprep.subr.bf16.mxu0 %v1339_v63  ;;  %v1377_v63 = vld [vmem:[#allocation7 + $0x240] ss:$12 sps:$4 sm:$0xff]  }
 0x115   :  { %v178_v8 = vpop.f32.mrb[0].mxu1 }
 0x116   :  { %v179_v9 = vadd.f32 %v178_v8, %v80_v6  ;;  %v180_v10 = vpop.f32.mrb[1].mxu1  ;;  %v1388_v6 = vld [vmem:[#allocation7 + $0x28c] ss:$12 sps:$4 sm:$0xff]   ;;  %v1391_v8 = vld [vmem:[#allocation7 + $0x2a4] ss:$12 sps:$4 sm:$0xff]  }
 0x117   :  { %v181_v11 = vadd.f32 %v180_v10, %v84_v7  ;;  %v182_v12 = vpop.f32.mrb[2].mxu1  ;;  %v1386_v7 = vld [vmem:[#allocation7 + $0x288] ss:$12 sps:$4 sm:$0xff]  }
 0x118   :  { %v226_v14 = vmax.f32 %v179_v9, 0.0  ;;  %v183_v15 = vpop.f32.mrb[3].mxu1  ;;  %v1389_v9 = vld [vmem:[#allocation7 + $0x2a0] ss:$12 sps:$4 sm:$0xff]   ;;  %v1394_v10 = vld [vmem:[#allocation7 + $0x2bc] ss:$12 sps:$4 sm:$0xff]  }
 0x119   :  { %v227_v16 = vmax.f32 %v181_v11, 0.0  ;;  %v1392_v11 = vld [vmem:[#allocation7 + $0x2b8] ss:$12 sps:$4 sm:$0xff]   ;;  %v1397_v12 = vld [vmem:[#allocation7 + $0x2d4] ss:$12 sps:$4 sm:$0xff]  }
 0x11a   :  { %v230_v21 = vpack.c.bf16 %v226_v14, %v226_v14  ;;  %v1400_v14 = vld [vmem:[#allocation7 + $0x2ec] ss:$12 sps:$4 sm:$0xff]   ;;  %v1398_v15 = vld [vmem:[#allocation7 + $0x2e8] ss:$12 sps:$4 sm:$0xff]  }
 0x11b   :  { %v231_v17 = vpack.c.bf16 %v227_v16, %v227_v16 }
 0x11d   :  { %923 = vmatprep.mubr.bf16.mxu0 %v231_v17  ;;  %1005 = vmatprep.mubr.bf16.mxu1 %v231_v17  ;;  %v219_v24 = vpop.f32.mrb[4].mxu1 }
 0x11e   :  { %924 = vmatmul.mubr.bf16.vlgmr.msra.gmra.mrb[0].mxu0 %v230_v21  ;;  %1006 = vmatmul.mubr.bf16.vlgmr.msra.gmra.mrb[8].mxu1 %v230_v21  ;;  %v221_v25 = vpop.f32.mrb[5].mxu1  ;;  %v220_v53 = vadd.f32 %v219_v24, %v88_v48  ;;  %v362_v21 = vld [vmem:[%s1601_s4] sm:$0x7] }
 0x11f   :  { %933 = vmatpush1.bf16.msra.mxu0 %v1337_v18  ;;  %1228 = vmatpush3.bf16.msra.mxu1 %v1341_v19  ;;  %v222_v28 = vadd.f32 %v221_v25, %v92_v20  ;;  %v223_v29 = vpop.f32.mrb[6].mxu1 }
 0x120   :  { %934 = vmatprep.subr.bf16.mxu0 %v1344_v22  ;;  %1229 = vmatprep.subr.bf16.mxu1 %v1345_v23  ;;  %v224_v32 = vpop.f32.mrb[7].mxu1  ;;  %v228_v58 = vmax.f32 %v220_v53, 0.0  ;;  %v375_v22 = vrot.slane %v362_v21, %v1578_v43 }
 0x121   :  { %v229_v33 = vmax.f32 %v222_v28, 0.0 }
 0x122   :  { %v232_v62 = vpack.c.bf16 %v228_v58, %v228_v58 }
 0x123   :  { %935 = vmatpush1.bf16.msra.mxu0 %v1342_v26  ;;  %1230 = vmatpush3.bf16.msra.mxu1 %v1346_v27  ;;  %v233_v36 = vpack.c.bf16 %v229_v33, %v229_v33  ;;  %v1056_v33 = vld [vmem:[%s1602_s5] sm:$0x7] }
 0x124   :  { %936 = vmatprep.subr.bf16.mxu0 %v1349_v30  ;;  %1231 = vmatprep.subr.bf16.mxu1 %v1350_v31  ;;  %v367_v30 = vrot.slane %v362_v21, %v1564_v3  ;;  %v371_v31 = vrot.slane %v362_v21, %v1571_v5 }
 0x125   :  { %1045 = vmatprep.mubr.bf16.mxu1 %v233_v36  ;;  %964 = vmatprep.mubr.bf16.mxu0 %v233_v36 }
 0x127   :  { %937 = vmatpush1.bf16.msra.mxu0 %v1347_v34  ;;  %1232 = vmatpush3.bf16.msra.mxu1 %v1351_v35  ;;  %v1061_v35 = vrot.slane %v1056_v33, %v1564_v3 }
 0x128   :  { %938 = vmatprep.subr.bf16.mxu0 %v1354_v37  ;;  %1233 = vmatprep.subr.bf16.mxu1 %v1355_v38  ;;  %v1065_v38 = vrot.slane %v1056_v33, %v1571_v5 }
 0x12b   :  { %939 = vmatpush1.bf16.msra.mxu0 %v1352_v39  ;;  %1234 = vmatpush3.bf16.msra.mxu1 %v1356_v40 }
 0x12c   :  { %940 = vmatprep.subr.bf16.mxu0 %v1359_v41  ;;  %1235 = vmatprep.subr.bf16.mxu1 %v1360_v42 }
 0x12f   :  { %941 = vmatpush1.bf16.msra.mxu0 %v1357_v44  ;;  %1236 = vmatpush3.bf16.msra.mxu1 %v1361_v45  ;;  %v1069_v45 = vrot.slane %v1056_v33, %v1578_v43 }
 0x130   :  { %942 = vmatprep.subr.bf16.mxu0 %v1364_v46  ;;  %1237 = vmatprep.subr.bf16.mxu1 %v1365_v47 }
 0x133   :  { %943 = vmatpush1.bf16.msra.mxu0 %v1362_v49  ;;  %1238 = vmatpush3.bf16.msra.mxu1 %v1366_v50 }
 0x134   :  { %944 = vmatprep.subr.bf16.mxu0 %v1369_v51  ;;  %1239 = vmatprep.subr.bf16.mxu1 %v1370_v52  ;;  %v1204_v51 = vld [vmem:[#allocation2] ss:$0 sm:$0xff] }
 0x137   :  { %945 = vmatpush1.bf16.msra.mxu0 %v1367_v54  ;;  %1240 = vmatpush3.bf16.msra.mxu1 %v1371_v55 }
 0x138   :  { %946 = vmatprep.subr.bf16.mxu0 %v1374_v56  ;;  %1241 = vmatprep.subr.bf16.mxu1 %v1375_v57 }
 0x13b   :  { %947 = vmatpush1.bf16.msra.mxu0 %v1372_v59  ;;  %1242 = vmatpush3.bf16.msra.mxu1 %v1376_v60 }
 0x13c   :  { %948 = vmatprep.subr.bf16.mxu0 %v1379_v61 }
 0x13e   :  { %1046 = vmatmul.mubr.bf16.vlgmr.msra.gmra.mrb[12].mxu1 %v232_v62 }
 0x13f   :  { %949 = vmatpush1.bf16.msra.mxu0 %v1377_v63 }
 0x140   :  { %950 = vmatprep.subr.bf16.mxu0 %v1382_v0 }
 0x143   :  { %951 = vmatpush1.bf16.msra.mxu0 %v1380_v1 }
 0x144   :  { %952 = vmatprep.subr.bf16.mxu0 %v1385_v2 }
 0x147   :  { %953 = vmatpush1.bf16.msra.mxu0 %v1383_v4 }
 0x148   :  { %954 = vmatprep.subr.bf16.mxu0 %v1388_v6 }
 0x14b   :  { %955 = vmatpush1.bf16.msra.mxu0 %v1386_v7 }
 0x14c   :  { %956 = vmatprep.subr.bf16.mxu0 %v1391_v8 }
 0x14f   :  { %957 = vmatpush1.bf16.msra.mxu0 %v1389_v9 }
 0x150   :  { %958 = vmatprep.subr.bf16.mxu0 %v1394_v10 }
 0x153   :  { %959 = vmatpush1.bf16.msra.mxu0 %v1392_v11 }
 0x154   :  { %960 = vmatprep.subr.bf16.mxu0 %v1397_v12 }
 0x157   :  { %961 = vmatpush1.bf16.msra.mxu0 %v1395_v13 }
 0x158   :  { %962 = vmatprep.subr.bf16.mxu0 %v1400_v14 }
 0x15b   :  { %963 = vmatpush1.bf16.msra.mxu0 %v1398_v15 }
 0x15e   :  { %965 = vmatmul.mubr.bf16.vlgmr.msra.gmra.mrb[0].mxu0 %v232_v62 }
 0x1f1   :  { %v1221_v16 = vpop.f32.mrb[8].mxu1 }
 0x1f2   :  { %v1222_v17 = vpop.f32.mrb[9].mxu1 }
 0x1f3   :  { %v1223_v18 = vadd.f32 %v1222_v17, %v1221_v16  ;;  %v1224_v19 = vpop.f32.mrb[10].mxu1 }
 0x1f4   :  { %v1225_v20 = vpop.f32.mrb[11].mxu1 }
 0x1f5   :  { %v1008_v25 = vadd.f32 %v1223_v18, %v375_v22 }
 0x211   :  { %v1243_v23 = vpop.f32.mrb[12].mxu1 }
 0x212   :  { %v1244_v24 = vpop.f32.mrb[13].mxu1 }
 0x213   :  { %v1245_v26 = vadd.f32 %v1244_v24, %v1243_v23  ;;  %v1246_v27 = vpop.f32.mrb[14].mxu1 }
 0x214   :  { %v1247_v28 = vpop.f32.mrb[15].mxu1 }
 0x215   :  { %v1048_v29 = vadd.f32 %v1245_v26, %v1008_v25 }
 0x217   :  { %v1055_v42 = vmax.f32 %v1048_v29, 0.0 }
 0x219   :  { %v1075_v48 = vmul.f32 %v1069_v45, %v1055_v42 }
 0x231   :  { %v966_v32 = vpop.f32.mrb[0].mxu0 }
 0x232   :  { %v1249_v34 = vadd.f32 %v966_v32, %v367_v30  ;;  %v968_v36 = vpop.f32.mrb[1].mxu0 }
 0x233   :  { %v1250_v37 = vadd.f32 %v968_v36, %v371_v31  ;;  %v970_v39 = vpop.f32.mrb[2].mxu0 }
 0x234   :  { %v1053_v40 = vmax.f32 %v1249_v34, 0.0  ;;  %v971_v41 = vpop.f32.mrb[3].mxu0 }
 0x235   :  { %v1054_v44 = vmax.f32 %v1250_v37, 0.0 }
 0x236   :  { %v1073_v46 = vmul.f32 %v1061_v35, %v1053_v40 }
 0x237   :  { %v1074_v47 = vmul.f32 %v1065_v38, %v1054_v44 }
 0x239   :  { %v1076_v49 = vadd.f32 %v1074_v47, %v1073_v46 }
 0x23b   :  { %v1077_v50 = vadd.f32 %v1076_v49, %v1075_v48 }
 0x23d   :  { %1078 = vadd.xlane.f32.xlu0 %v1077_v50 }
 0x2ca   :  { %v1079_v52 = vpop.xlane.xlu0 %1078 }
 0x2cb   :  { %v1087_v3 = vadd.f32 %v1204_v51, %v1079_v52 }
 0x2cd   :  { %1089 = vst.msk [vmem:[%s1604_s7] sm:$0xff] %vm1088_vm2, %v1087_v3 }
 0x2ce   :  { %1094 = vsyncpa [#allocation4], 1 }
 0x2cf   :  { %1095 = vsyncpa [#allocation6], 1 }

</bundles_post_ra>
